<compile_context>
chip_gen: v7x
topology: tpu7x:2x2x1
jax: 0.10.0
libtpu: 0.0.40
codegen_flags: <defaults>
</compile_context>

<pallas_src>
import functools
import itertools
import math

import jax
import jax.numpy as jnp
from jax.experimental import pallas as pl
from jax.experimental.pallas import tpu as pltpu

BN_EPS = 1e-5


def _round_up(v, m):
    return -(-v // m) * m


# ---------------------------------------------------------------------------
# Pallas kernels
# ---------------------------------------------------------------------------
def _conv_kernel(x_ref, w_ref, b_ref, o_ref, *, offsets, relu):
    """Fused dilated KxK conv + BN-affine + optional ReLU (single MXU matmul).

    x_ref: (Cin_p, Lext) bf16  -- zero-padded image flattened over (rows, Wp),
                                  with `er` extra zero rows top/bottom so every
                                  tap slice is a pure in-bounds static shift.
    w_ref: (Cout, T*Cin_p) bf16 -- tap-major flattened weights (BN folded).
    b_ref: (Cout, 1) f32        -- folded bias.
    o_ref: (Cout, Lp)           -- lane-dense output (Lp multiple of 128).
    """
    Lp = o_ref.shape[-1]
    pieces = [x_ref[:, off:off + Lp] for off in offsets]
    slab = pieces[0] if len(pieces) == 1 else jnp.concatenate(pieces, axis=0)
    out = jnp.dot(w_ref[...], slab, preferred_element_type=jnp.float32)
    out = out + b_ref[...]
    if relu:
        out = jnp.maximum(out, 0.0)
    o_ref[...] = out.astype(o_ref.dtype)


def _fuse_tail_kernel(x_ref, w_ref, b_ref, fused_ref, side_ref):
    """Fused: 1x1 outconv over stacked side maps + sigmoid, and side sigmoids.

    x_ref: (Cs_p, TL) f32 -- stacked side maps (channel-major, batch*HW lanes).
    w_ref: (OC, Cs_p) f32 ; b_ref: (OC, 1) f32.
    """
    x = x_ref[...]
    z = jnp.dot(w_ref[...], x, preferred_element_type=jnp.float32) + b_ref[...]
    fused = pl.reciprocal(1.0 + jnp.exp(-z), approx=True)
    side = pl.reciprocal(1.0 + jnp.exp(-x), approx=True)
    fused_ref[...] = jnp.clip(fused, 0.0, 1.0).astype(fused_ref.dtype)
    side_ref[...] = jnp.clip(side, 0.0, 1.0).astype(side_ref.dtype)


# ---------------------------------------------------------------------------
# Conv wrapper (flat-shift formulation, single fused-K matmul, no im2col)
# ---------------------------------------------------------------------------
@functools.partial(jax.jit, static_argnames=("ksize", "dilation", "relu", "out_dtype"))
def conv2d_fused(x, w, b, *, ksize, dilation, relu, out_dtype):
    """x: (N, Cin, H, W); w: (Cout, T*Cin_p) bf16; b: (Cout, 1) f32."""
    N, Cin, H, W = x.shape
    Cout, KC = w.shape
    T = ksize * ksize
    Cin_p = KC // T
    c = ksize // 2
    pad = dilation * c
    Hp, Wp = H + 2 * pad, W + 2 * pad

    # only the H valid output rows are computed (left/right pad cols still are,
    # sliced off afterwards); lane axis rounded to a multiple of 128.
    Lout = H * Wp
    Lp = _round_up(Lout, 128)
    pad_L = Lp - Lout
    # extra zero rows so every tap slice [off, off+Lp) stays in-bounds:
    #   need er*Wp >= pad + pad_L  (and er*Wp >= pad for the lower bound)
    er = -(-(pad + pad_L) // Wp)
    Lext = (Hp + 2 * er) * Wp

    # single pad: channel pad to Cin_p, spatial pad, and the er extension rows.
    xe = jnp.pad(x.astype(jnp.bfloat16),
                 ((0, 0), (0, Cin_p - Cin), (pad + er, pad + er), (pad, pad)))
    xe = xe.reshape(N, Cin_p, Lext)

    # output position q (valid row y-pad, col x) lives at flat index
    # (er+pad)*Wp + q; tap (ky,kx) reads that plus a pure static shift.
    base = (er + pad) * Wp
    offsets = tuple(base + (ky - c) * dilation * Wp + (kx - c) * dilation
                    for ky in range(ksize) for kx in range(ksize))

    kern = functools.partial(_conv_kernel, offsets=offsets, relu=relu)
    out = pl.pallas_call(
        kern,
        out_shape=jax.ShapeDtypeStruct((N, Cout, Lp), out_dtype),
        grid=(N,),
        in_specs=[
            pl.BlockSpec((None, Cin_p, Lext), lambda n: (n, 0, 0)),
            pl.BlockSpec((Cout, KC), lambda n: (0, 0)),
            pl.BlockSpec((Cout, 1), lambda n: (0, 0)),
        ],
        out_specs=pl.BlockSpec((None, Cout, Lp), lambda n: (n, 0, 0)),
        compiler_params=pltpu.CompilerParams(
            dimension_semantics=("parallel",),
            vmem_limit_bytes=32 * 1024 * 1024,
        ),
    )(xe, w, b)

    # drop padded lanes / padded columns.
    out = out[:, :, :Lout].reshape(N, Cout, H, Wp)
    if pad > 0:
        out = out[:, :, :, pad:pad + W]
    return out


@jax.jit
def fuse_and_sigmoid(maps2d, w, b):
    """maps2d: (Cs, NL) f32 stacked side maps; w: (OC, Cs); b: (OC, 1).

    Returns (fused (OC, NL), side_sigmoids (Cs, NL)) in one Pallas call.
    """
    Cs, NL = maps2d.shape
    OC = w.shape[0]
    Cs_p = _round_up(Cs, 8)
    NLp = _round_up(NL, 128)
    xp = jnp.pad(maps2d, ((0, Cs_p - Cs), (0, NLp - NL)))
    wp = jnp.pad(w, ((0, 0), (0, Cs_p - Cs)))

    TL = NLp
    for cand in (2048, 1024, 512, 256, 128):
        if NLp % cand == 0:
            TL = cand
            break

    fused, side = pl.pallas_call(
        _fuse_tail_kernel,
        out_shape=(jax.ShapeDtypeStruct((OC, NLp), jnp.float32),
                   jax.ShapeDtypeStruct((Cs_p, NLp), jnp.float32)),
        grid=(NLp // TL,),
        in_specs=[
            pl.BlockSpec((Cs_p, TL), lambda i: (0, i)),
            pl.BlockSpec((OC, Cs_p), lambda i: (0, 0)),
            pl.BlockSpec((OC, 1), lambda i: (0, 0)),
        ],
        out_specs=(pl.BlockSpec((OC, TL), lambda i: (0, i)),
                   pl.BlockSpec((Cs_p, TL), lambda i: (0, i))),
        compiler_params=pltpu.CompilerParams(
            dimension_semantics=("parallel",),
            vmem_limit_bytes=32 * 1024 * 1024,
        ),
    )(xp, wp, b)
    return fused[:, :NL], side[:Cs, :NL]


# ---------------------------------------------------------------------------
# Glue ops (NCHW, plain JAX)
# ---------------------------------------------------------------------------
def maxpool2x2_ceil(x):  # kernel 2, stride 2, ceil_mode=True
    N, C, H, W = x.shape
    OH, OW = -(-H // 2), -(-W // 2)
    neg = jnp.finfo(x.dtype).min
    xp = jnp.pad(x, ((0, 0), (0, 0), (0, OH * 2 - H), (0, OW * 2 - W)),
                 constant_values=neg)
    xp = xp.reshape(N, C, OH, 2, OW, 2)
    return jnp.max(xp, axis=(3, 5))


def upsample_bilinear(x, out_hw):  # align_corners=False (PyTorch semantics)
    N, C, H, W = x.shape
    OH, OW = out_hw
    if (OH, OW) == (H, W):
        return x

    def coords(out_size, in_size):
        i = jnp.arange(out_size, dtype=jnp.float32)
        src = (i + 0.5) * (in_size / out_size) - 0.5
        src = jnp.clip(src, 0.0, in_size - 1.0)
        lo = jnp.floor(src).astype(jnp.int32)
        hi = jnp.minimum(lo + 1, in_size - 1)
        frac = src - lo.astype(jnp.float32)
        return lo, hi, frac

    ylo, yhi, yf = coords(OH, H)
    xlo, xhi, xf = coords(OW, W)
    # gather in native dtype, widen only for the lerp.
    top = x[:, :, ylo, :].astype(jnp.float32)
    bot = x[:, :, yhi, :].astype(jnp.float32)
    rows = top * (1.0 - yf)[None, None, :, None] + bot * yf[None, None, :, None]
    left, right = rows[:, :, :, xlo], rows[:, :, :, xhi]
    out = left * (1.0 - xf)[None, None, None, :] + right * xf[None, None, None, :]
    return out.astype(x.dtype)


# ---------------------------------------------------------------------------
# Deterministic parameter init (BN folded, lane-dense tap-flattened weights)
# ---------------------------------------------------------------------------
_KEY = jax.random.PRNGKey(0)
_COUNTER = itertools.count()


def _next_key():
    return jax.random.fold_in(_KEY, next(_COUNTER))


def _prep_conv(w, conv_b, scale, ksize):
    """w: (k, k, Cin, Cout).  Fold BN scale, flatten tap-major to (Cout, T*Cin_p)."""
    cin, cout = w.shape[2], w.shape[3]
    cin_p = _round_up(cin, 8)
    wf = w * scale[None, None, None, :]
    wt = jnp.transpose(wf, (3, 0, 1, 2)).reshape(cout, ksize * ksize, cin)
    if cin_p > cin:
        wt = jnp.pad(wt, ((0, 0), (0, 0), (0, cin_p - cin)))
    wt = wt.reshape(cout, ksize * ksize * cin_p)
    bias = (conv_b * scale).reshape(cout, 1).astype(jnp.float32)
    return {"w": wt.astype(jnp.bfloat16), "b": bias}


def init_cobare(in_ch, out_ch):
    w = 0.2 * jax.random.normal(_next_key(), (3, 3, in_ch, out_ch), jnp.float32)
    conv_b = 0.05 * jax.random.normal(_next_key(), (out_ch,), jnp.float32)
    # eval-mode BN (gamma=1, beta=0, mean=0, var=1) folded into conv
    scale = jnp.full((out_ch,), 1.0 / math.sqrt(1.0 + BN_EPS), jnp.float32)
    return _prep_conv(w, conv_b, scale, 3)


def init_plain_conv(ksize, in_ch, out_ch):
    w = 0.2 * jax.random.normal(_next_key(), (ksize, ksize, in_ch, out_ch), jnp.float32)
    b = 0.05 * jax.random.normal(_next_key(), (out_ch,), jnp.float32)
    return _prep_conv(w, b, jnp.ones((out_ch,), jnp.float32), ksize)


def init_outconv(in_ch, out_ch):
    """1x1 fuse conv, kept un-padded for the fused tail kernel."""
    w = 0.2 * jax.random.normal(_next_key(), (out_ch, in_ch), jnp.float32)
    b = 0.05 * jax.random.normal(_next_key(), (out_ch,), jnp.float32).reshape(out_ch, 1)
    return {"w": w, "b": b}


# ---------------------------------------------------------------------------
# RSU block (dilated=True path)
# ---------------------------------------------------------------------------
def init_rsu(height, in_ch, mid_ch, out_ch):
    p = {"height": height}
    p["cbr_in"] = init_cobare(in_ch, out_ch)
    p["en_1"] = init_cobare(out_ch, mid_ch)
    p["de_1"] = init_cobare(mid_ch * 2, out_ch)
    for i in range(2, height):
        p[f"en_{i}"] = init_cobare(mid_ch, mid_ch)
        p[f"de_{i}"] = init_cobare(mid_ch * 2, mid_ch)
    p[f"en_{height}"] = init_cobare(mid_ch, mid_ch)
    return p


def cobare_apply(p, x, dilate=1):
    return conv2d_fused(x, p["w"], p["b"], ksize=3, dilation=dilate,
                        relu=True, out_dtype=jnp.bfloat16)


def rsu_forward(p, x):
    height = p["height"]
    xin = cobare_apply(p["cbr_in"], x, 1)

    def unet(xu, h):
        if h < height:
            dil = 1 if h == 1 else 2 ** (h - 1)
            x1 = cobare_apply(p[f"en_{h}"], xu, dil)
            x2 = unet(x1, h + 1)
            return cobare_apply(p[f"de_{h}"], jnp.concatenate([x2, x1], axis=1), dil)
        return cobare_apply(p[f"en_{h}"], xu, 2 ** (height - 1))

    return xin + unet(xin, 1)


# ---------------------------------------------------------------------------
# U2NET
# ---------------------------------------------------------------------------
# {stage: [name, (RSU height, in_ch, mid_ch, out_ch), side_ch]} ; dilated=True
CFGS = {
    "stage1":  ["En_1", (3, 3, 4, 8), -1],
    "stage2":  ["En_2", (3, 8, 4, 8), -1],
    "stage3":  ["En_3", (3, 8, 4, 8), -1],
    "stage4":  ["En_4", (2, 8, 4, 8), -1],
    "stage5":  ["En_5", (2, 8, 4, 8), -1],
    "stage6":  ["En_6", (2, 8, 4, 8), 8],
    "stage5d": ["De_5", (2, 16, 4, 8), 8],
    "stage4d": ["De_4", (2, 16, 4, 8), 8],
    "stage3d": ["De_3", (3, 16, 4, 8), 8],
    "stage2d": ["De_2", (3, 16, 4, 8), 8],
    "stage1d": ["De_1", (3, 16, 4, 8), 8],
}
OUT_CH = 1


def init_u2net(cfgs, out_ch):
    params = {}
    height = int((len(cfgs) + 1) / 2)
    for k, v in cfgs.items():
        params[k] = init_rsu(*v[1])
        if v[2] > 0:
            params[f"side{v[0][-1]}"] = init_plain_conv(3, v[2], out_ch)
    params["outconv"] = init_outconv(height * out_ch, out_ch)
    return params, height


def u2net_forward(params, height, x_nchw):
    x = x_nchw.astype(jnp.bfloat16)          # bf16 activations, f32 accumulate

    sizes = {}
    size = list(x.shape[2:4])
    for h in range(1, height):
        sizes[h] = tuple(size)
        size = [math.ceil(s / 2) for s in size]

    maps = []

    def side(xs, h):
        sp = params[f"side{h}"]
        y = conv2d_fused(xs, sp["w"], sp["b"], ksize=3, dilation=1,
                         relu=False, out_dtype=jnp.float32)
        maps.append(upsample_bilinear(y, sizes[1]))

    def unet(xu, h=1):
        if h < height:
            x1 = rsu_forward(params[f"stage{h}"], xu)
            x2 = unet(maxpool2x2_ceil(x1), h + 1)
            xo = rsu_forward(params[f"stage{h}d"], jnp.concatenate([x2, x1], axis=1))
            side(xo, h)
            return upsample_bilinear(xo, sizes[h - 1]) if h > 1 else xo
        xo = rsu_forward(params[f"stage{height}"], xu)
        side(xo, height)
        return upsample_bilinear(xo, sizes[h - 1])

    unet(x)
    maps.reverse()                            # [s1 .. s6], f32, full resolution

    # fused tail: maps concat -> 1x1 outconv + sigmoid AND all side-map
    # sigmoids in a single Pallas call (channel-major, batch*HW in lanes).
    cat = jnp.concatenate(maps, axis=1)       # (N, height*OC, H1, W1)
    N, Cs, H1, W1 = cat.shape
    x2d = jnp.transpose(cat, (1, 0, 2, 3)).reshape(Cs, N * H1 * W1)
    oc = params["outconv"]
    fused2d, side2d = fuse_and_sigmoid(x2d, oc["w"], oc["b"])

    fused = jnp.transpose(fused2d.reshape(OUT_CH, N, H1, W1), (1, 0, 2, 3))
    sides = side2d.reshape(height, OUT_CH, N, H1, W1)
    sides = jnp.transpose(sides, (0, 2, 1, 3, 4))
    return [fused] + [sides[i] for i in range(height)]


# ---------------------------------------------------------------------------
if __name__ == "__main__":
    params, net_height = init_u2net(CFGS, OUT_CH)
    x = jax.random.normal(jax.random.PRNGKey(0), (2, 3, 16, 16), jnp.float32)
    outs = u2net_forward(params, net_height, x)
    outs = [jax.block_until_ready(o) for o in outs]
    assert len(outs) == 7, "U2NET must return fused map + 6 side maps"
    for o in outs:
        assert o.shape == (2, OUT_CH, 16, 16)
        assert bool(jnp.all(jnp.isfinite(o)))
        assert bool(jnp.all((o >= 0.0) & (o <= 1.0)))
    print("KERNEL_OK")
</pallas_src>

<mosaic_0001>
module attributes {stable_mosaic.version = 11 : i64} {
  func.func @_conv_kernel(%arg0: i32, %arg1: memref<1x8x540xbf16, #tpu.memory_space<vmem>>, %arg2: memref<8x72xbf16, #tpu.memory_space<vmem>>, %arg3: memref<8x1xf32, #tpu.memory_space<vmem>>, %arg4: memref<1x8x384xbf16, #tpu.memory_space<vmem>>) attributes {dimension_semantics = [#tpu.dimension_semantics<parallel>], iteration_bounds = array<i64: 2>, scalar_prefetch = 0 : i64, scratch_operands = 0 : i64, tpu.core_type = #tpu.core_type<tc>, window_params = [{transform_indices = @transform_0, window_bounds = array<i64: 1, 8, 540>}, {pipeline_mode = #tpu.pipeline_mode<synchronous>, transform_indices = @transform_1, window_bounds = array<i64: 8, 72>}, {pipeline_mode = #tpu.pipeline_mode<synchronous>, transform_indices = @transform_2, window_bounds = array<i64: 8, 1>}, {transform_indices = @transform_3, window_bounds = array<i64: 1, 8, 384>}]} {
    %c0 = arith.constant 0 : index
    %c0_0 = arith.constant 0 : index
    %c107 = arith.constant 107 : index
    %0 = vector.load %arg1[%c0, %c0_0, %c107] : memref<1x8x540xbf16, #tpu.memory_space<vmem>>, vector<1x8x384xbf16>
    %1 = vector.shape_cast %0 : vector<1x8x384xbf16> to vector<8x384xbf16>
    %c0_1 = arith.constant 0 : index
    %c0_2 = arith.constant 0 : index
    %c108 = arith.constant 108 : index
    %2 = vector.load %arg1[%c0_1, %c0_2, %c108] : memref<1x8x540xbf16, #tpu.memory_space<vmem>>, vector<1x8x384xbf16>
    %3 = vector.shape_cast %2 : vector<1x8x384xbf16> to vector<8x384xbf16>
    %c0_3 = arith.constant 0 : index
    %c0_4 = arith.constant 0 : index
    %c109 = arith.constant 109 : index
    %4 = vector.load %arg1[%c0_3, %c0_4, %c109] : memref<1x8x540xbf16, #tpu.memory_space<vmem>>, vector<1x8x384xbf16>
    %5 = vector.shape_cast %4 : vector<1x8x384xbf16> to vector<8x384xbf16>
    %c0_5 = arith.constant 0 : index
    %c0_6 = arith.constant 0 : index
    %c125 = arith.constant 125 : index
    %6 = vector.load %arg1[%c0_5, %c0_6, %c125] : memref<1x8x540xbf16, #tpu.memory_space<vmem>>, vector<1x8x384xbf16>
    %7 = vector.shape_cast %6 : vector<1x8x384xbf16> to vector<8x384xbf16>
    %c0_7 = arith.constant 0 : index
    %c0_8 = arith.constant 0 : index
    %c126 = arith.constant 126 : index
    %8 = vector.load %arg1[%c0_7, %c0_8, %c126] : memref<1x8x540xbf16, #tpu.memory_space<vmem>>, vector<1x8x384xbf16>
    %9 = vector.shape_cast %8 : vector<1x8x384xbf16> to vector<8x384xbf16>
    %c0_9 = arith.constant 0 : index
    %c0_10 = arith.constant 0 : index
    %c127 = arith.constant 127 : index
    %10 = vector.load %arg1[%c0_9, %c0_10, %c127] : memref<1x8x540xbf16, #tpu.memory_space<vmem>>, vector<1x8x384xbf16>
    %11 = vector.shape_cast %10 : vector<1x8x384xbf16> to vector<8x384xbf16>
    %c0_11 = arith.constant 0 : index
    %c0_12 = arith.constant 0 : index
    %c143 = arith.constant 143 : index
    %12 = vector.load %arg1[%c0_11, %c0_12, %c143] : memref<1x8x540xbf16, #tpu.memory_space<vmem>>, vector<1x8x384xbf16>
    %13 = vector.shape_cast %12 : vector<1x8x384xbf16> to vector<8x384xbf16>
    %c0_13 = arith.constant 0 : index
    %c0_14 = arith.constant 0 : index
    %c144 = arith.constant 144 : index
    %14 = vector.load %arg1[%c0_13, %c0_14, %c144] : memref<1x8x540xbf16, #tpu.memory_space<vmem>>, vector<1x8x384xbf16>
    %15 = vector.shape_cast %14 : vector<1x8x384xbf16> to vector<8x384xbf16>
    %c0_15 = arith.constant 0 : index
    %c0_16 = arith.constant 0 : index
    %c145 = arith.constant 145 : index
    %16 = vector.load %arg1[%c0_15, %c0_16, %c145] : memref<1x8x540xbf16, #tpu.memory_space<vmem>>, vector<1x8x384xbf16>
    %17 = vector.shape_cast %16 : vector<1x8x384xbf16> to vector<8x384xbf16>
    %18 = tpu.concatenate %1, %3, %5, %7, %9, %11, %13, %15, %17 in 0 : vector<8x384xbf16>, vector<8x384xbf16>, vector<8x384xbf16>, vector<8x384xbf16>, vector<8x384xbf16>, vector<8x384xbf16>, vector<8x384xbf16>, vector<8x384xbf16>, vector<8x384xbf16> -> vector<72x384xbf16>
    %c0_17 = arith.constant 0 : index
    %c0_18 = arith.constant 0 : index
    %19 = vector.load %arg2[%c0_17, %c0_18] : memref<8x72xbf16, #tpu.memory_space<vmem>>, vector<8x72xbf16>
    %cst = arith.constant dense<0.000000e+00> : vector<8x384xf32>
    %20 = tpu.matmul %19, %18, %cst {dimension_numbers = #tpu.dot_dimension_numbers<[1], [0], [0], [1], [0, 0, 1, 1], [], []>} : vector<8x72xbf16>, vector<72x384xbf16>, vector<8x384xf32> -> vector<8x384xf32>
    %c0_19 = arith.constant 0 : index
    %c0_20 = arith.constant 0 : index
    %21 = vector.load %arg3[%c0_19, %c0_20] : memref<8x1xf32, #tpu.memory_space<vmem>>, vector<8x1xf32>
    %22 = vector.broadcast %21 : vector<8x1xf32> to vector<8x384xf32>
    %23 = arith.addf %20, %22 : vector<8x384xf32>
    %cst_21 = arith.constant 0.000000e+00 : f32
    %24 = vector.broadcast %cst_21 : f32 to vector<8x384xf32>
    %25 = arith.maximumf %23, %24 : vector<8x384xf32>
    %26 = arith.truncf %25 : vector<8x384xf32> to vector<8x384xbf16>
    %c0_22 = arith.constant 0 : index
    %c0_23 = arith.constant 0 : index
    %c0_24 = arith.constant 0 : index
    %27 = vector.load %arg4[%c0_22, %c0_23, %c0_24] : memref<1x8x384xbf16, #tpu.memory_space<vmem>>, vector<1x8x384xbf16>
    %28 = vector.shape_cast %27 : vector<1x8x384xbf16> to vector<8x384xbf16>
    %29 = vector.shape_cast %26 : vector<8x384xbf16> to vector<1x8x384xbf16>
    tpu.vector_store %arg4[%c0_22, %c0_23, %c0_24], %29 {strides = array<i32>} : memref<1x8x384xbf16, #tpu.memory_space<vmem>>, vector<1x8x384xbf16>,
    return
  }
  func.func @transform_0(%arg0: i32) -> (i32, i32, i32) {
    %c0_i32 = arith.constant 0 : i32
    %c0_i32_0 = arith.constant 0 : i32
    %c0_i32_1 = arith.constant 0 : i32
    return %arg0, %c0_i32, %c0_i32_0 : i32, i32, i32
  }
  func.func @transform_1(%arg0: i32) -> (i32, i32) {
    %c0_i32 = arith.constant 0 : i32
    %c0_i32_0 = arith.constant 0 : i32
    %c0_i32_1 = arith.constant 0 : i32
    return %c0_i32, %c0_i32_0 : i32, i32
  }
  func.func @transform_2(%arg0: i32) -> (i32, i32) {
    %c0_i32 = arith.constant 0 : i32
    %c0_i32_0 = arith.constant 0 : i32
    %c0_i32_1 = arith.constant 0 : i32
    return %c0_i32, %c0_i32_0 : i32, i32
  }
  func.func @transform_3(%arg0: i32) -> (i32, i32, i32) {
    %c0_i32 = arith.constant 0 : i32
    %c0_i32_0 = arith.constant 0 : i32
    %c0_i32_1 = arith.constant 0 : i32
    return %arg0, %c0_i32, %c0_i32_0 : i32, i32, i32
  }
}

</mosaic_0001>

<bundles_post_ra>
// kernel: conv2d_fused.1
= control target key start
LH: loop header
LB: loop body
LE: loop exit
PB: predicated region body
PF: predicated region fallthrough
CT: control target
= control target key end

     0   :  { %s714_s12 = smov 0   ;;  %s909_s0 = inlined_call_operand.vmem [shape: bf16[2,8,540], index: 0, kind: input, shape index: {}]   ;;  %s910_s1 = inlined_call_operand.vmem [shape: bf16[8,72], index: 1, kind: input, shape index: {}]   ;;  %s911_s2 = inlined_call_operand.vmem [shape: f32[8,1], index: 2, kind: input, shape index: {}]   ;;  %s912_s3 = inlined_call_operand.vmem [shape: bf16[2,8,384], index: 3, kind: output, shape index: {}]  }
   0x1 LB: > { %s599_s13 = sadd.s32 4294967295, %s680_s12   ;;  %p603_p0 = scmp.ge.s32.totalorder %s680_s12, 1  ;;  %s680_s12 = sphi %s714_s12, %s13_s12  }
   0x2   : > { %p137_p1 = scmp.lt.s32.totalorder %s680_s12, 3 }
   0x4   : > { %p138_p2 = pnand %p603_p0, %p137_p1 }
   0x5   : > { %p161_p3 = scmp.lt.s32.totalorder (!%p138_p2), %s599_s13, 1  ;;  %s682_s18 = smov (!%p138_p2), 127   ;;  %vm292_vm0 = vcmask (!%p138_p2), 1043456   ;;  %v691_v41 = vmov (!%p138_p2), 0.0   ;;  %vm288_vm1 = vcmask (!%p138_p2), 736256   ;;  %vm194_vm2 = vcmask (!%p138_p2), 1039360  }
   0x6   : > { %141 = sbr.rel (%p138_p2) target bundleno = 567 (0x237), region = 32  ;;  %s683_s19 = smov (!%p138_p2), 126   ;;  %629 = vmatprep.subr.bf16.mxu1 (!%p138_p2), %v691_v41  ;;  %vm218_vm3 = vcmask (!%p138_p2), 900096   ;;  %vm206_vm4 = vcmask (!%p138_p2), 1031168   ;;  %vm242_vm5 = vcmask (!%p138_p2), 883712   ;;  %vm230_vm6 = vcmask (!%p138_p2), 891904  }
   0x7   : > { %s684_s20 = smov (!%p138_p2), 110   ;;  %s685_s21 = smov (!%p138_p2), 109   ;;  %vm276_vm7 = vcmask (!%p138_p2), 744448   ;;  %vm264_vm8 = vcmask (!%p138_p2), 752640   ;;  %vm693_vm9 = vmmov (!%p138_p2), 0   ;;  %vm404_vm10 = vcmask (!%p138_p2), 171008  }
   0x8   : > { %s686_s22 = smov (!%p138_p2), 108   ;;  %s687_s23 = smov (!%p138_p2), 92   ;;  %639 = vmatprep.mubr.msk.bf16.mxu1 (!%p138_p2), %vm693_vm9, %v691_v41  ;;  %vm432_vm11 = vcmask (!%p138_p2), 588800  }
   0x9   : > { %s688_s24 = smov (!%p138_p2), 91   ;;  %s689_s25 = smov (!%p138_p2), 90  }
   0xa   : > { %s690_s26 = smov (!%p138_p2), 21  }
   0xd   : > { %s914_s13 = smov (!%p161_p3, %s599_s13), 1 }
   0xe   : > { %s643_s14 = smul.u32 20, %s914_s13 }
   0xf   : > { %s644_s4 = smul.u32 12, %s914_s13 }
  0x10   : > { %s728_s17 = scalar_lea.vmem %s909_s0, %s643_s14 }
  0x11   : > { %v173_v0 = vld [vmem:[%s728_s17 + $0x8] sm:$0xff]  ;;  %v172_v1 = vld [vmem:[%s728_s17] sm:$0xff]  ;;  %s170_s7 = scalar_lea.vmem %s912_s3, %s644_s4 }
  0x12   : > { %v609_v2 = vcombine.high %v173_v0, %v173_v0  ;;  %v732_v3 = vcombine.high %v172_v1, %v172_v1  ;;  %v735_v4 = vcombine.low %v173_v0, %v173_v0  ;;  %v737_v5 = vcombine.low %v172_v1, %v172_v1  ;;  %v174_v6 = vld [vmem:[%s728_s17 + $0x4] sm:$0xff]  ;;  %v175_v9 = vld [vmem:[%s728_s17 + $0xc] sm:$0xff] }
  0x13   : > { %v610_v7 = vcombine.low %v174_v6, %v174_v6  ;;  %v611_v8 = vcombine.high %v174_v6, %v174_v6  ;;  %v612_v10 = vcombine.low %v175_v9, %v175_v9  ;;  %v613_v11 = vcombine.high %v175_v9, %v175_v9 }
  0x14   : > { %192 = vrot.lane.b32.xlu1 %v609_v2, %s682_s18  ;;  %188 = vrot.lane.b32.xlu0 %v732_v3, %s682_s18 }
  0x18   : > { %190 = vrot.lane.b32.xlu0 %v735_v4, %s682_s18  ;;  %186 = vrot.lane.b32.xlu1 %v737_v5, %s682_s18 }
  0x1c   : > { %200 = vrot.lane.b32.xlu0 %v732_v3, %s683_s19  ;;  %202 = vrot.lane.b32.xlu1 %v735_v4, %s683_s19 }
  0x20   : > { %204 = vrot.lane.b32.xlu0 %v609_v2, %s683_s19  ;;  %212 = vrot.lane.b32.xlu1 %v732_v3, %s684_s20 }
  0x24   : > { %214 = vrot.lane.b32.xlu0 %v735_v4, %s684_s20  ;;  %216 = vrot.lane.b32.xlu1 %v609_v2, %s684_s20 }
  0x28   : > { %198 = vrot.lane.b32.xlu0 %v737_v5, %s683_s19  ;;  %210 = vrot.lane.b32.xlu1 %v737_v5, %s684_s20 }
  0x2c   : > { %224 = vrot.lane.b32.xlu0 %v732_v3, %s685_s21  ;;  %226 = vrot.lane.b32.xlu1 %v735_v4, %s685_s21 }
  0x30   : > { %228 = vrot.lane.b32.xlu0 %v609_v2, %s685_s21  ;;  %236 = vrot.lane.b32.xlu1 %v732_v3, %s686_s22 }
  0x34   : > { %238 = vrot.lane.b32.xlu0 %v735_v4, %s686_s22  ;;  %240 = vrot.lane.b32.xlu1 %v609_v2, %s686_s22 }
  0x38   : > { %222 = vrot.lane.b32.xlu0 %v737_v5, %s685_s21  ;;  %234 = vrot.lane.b32.xlu1 %v737_v5, %s686_s22 }
  0x3c   : > { %256 = vrot.lane.b32.xlu0 %v610_v7, %s687_s23  ;;  %258 = vrot.lane.b32.xlu1 %v611_v8, %s687_s23 }
  0x40   : > { %260 = vrot.lane.b32.xlu0 %v612_v10, %s687_s23  ;;  %268 = vrot.lane.b32.xlu1 %v610_v7, %s688_s24 }
  0x44   : > { %270 = vrot.lane.b32.xlu0 %v611_v8, %s688_s24  ;;  %272 = vrot.lane.b32.xlu1 %v612_v10, %s688_s24 }
  0x48   : > { %262 = vrot.lane.b32.xlu0 %v613_v11, %s687_s23  ;;  %274 = vrot.lane.b32.xlu1 %v613_v11, %s688_s24 }
  0x4c   : > { %280 = vrot.lane.b32.xlu0 %v610_v7, %s689_s25  ;;  %282 = vrot.lane.b32.xlu1 %v611_v8, %s689_s25 }
  0x50   : > { %284 = vrot.lane.b32.xlu0 %v612_v10, %s689_s25  ;;  %286 = vrot.lane.b32.xlu1 %v613_v11, %s689_s25 }
  0x86   : > { %v193_v12 = vpop.permute.xlu1 %192  ;;  %v189_v13 = vpop.permute.xlu0 %188 }
  0x87   : > { %v304_v14 = vsel %vm292_vm0, %v609_v2, %v193_v12 }
  0x88   : > { %370 = vrot.lane.b32.xlu1 %v304_v14, %s690_s26 }
  0x8a   : > { %v191_v15 = vpop.permute.xlu0 %190  ;;  %v187_v16 = vpop.permute.xlu1 %186 }
  0x8b   : > { %v197_v47 = vsel %vm194_vm2, %v191_v15, %v193_v12  ;;  %v196_v49 = vsel %vm194_vm2, %v189_v13, %v191_v15  ;;  %v195_v54 = vsel %vm194_vm2, %v187_v16, %v189_v13  ;;  %v692_v16 = vmov 0  }
  0x8c   : > { %v301_v50 = vsel %vm292_vm0, %v735_v4, %v197_v47  ;;  %v298_v53 = vsel %vm292_vm0, %v732_v3, %v196_v49  ;;  %v295_v58 = vsel %vm292_vm0, %v737_v5, %v195_v54  ;;  %477 = vmatprep.mubr.bf16.mxu0 %v692_v16  ;;  %665 = vset.pattern.permute.xlu0 %v692_v16 }
  0x8e   : > { %v757_v17 = vpop.permute.xlu0 %200  ;;  %v759_v18 = vpop.permute.xlu1 %202 }
  0x8f   : > { %v208_v62 = vsel %vm206_vm4, %v757_v17, %v759_v18 }
  0x92   : > { %v205_v19 = vpop.permute.xlu0 %204  ;;  %v761_v20 = vpop.permute.xlu1 %212 }
  0x93   : > { %v209_v52 = vsel %vm206_vm4, %v759_v18, %v205_v19 }
  0x96   : > { %v215_v21 = vpop.permute.xlu0 %214  ;;  %v217_v22 = vpop.permute.xlu1 %216 }
  0x97   : > { %v316_v23 = vsel %vm292_vm0, %v205_v19, %v217_v22  ;;  %v221_v51 = vsel %vm218_vm3, %v215_v21, %v217_v22  ;;  %v220_v59 = vsel %vm218_vm3, %v761_v20, %v215_v21  ;;  %v342_v22 = vld [vmem:[%s911_s2] sm:$0xff] }
  0x98   : > { %378 = vrot.lane.b32.xlu1 %v316_v23, %s690_s26  ;;  %v313_v55 = vsel %vm292_vm0, %v209_v52, %v221_v51  ;;  %v310_v0 = vsel %vm292_vm0, %v208_v62, %v220_v59 }
  0x9a   : > { %v199_v24 = vpop.permute.xlu0 %198  ;;  %v211_v25 = vpop.permute.xlu1 %210 }
  0x9b   : > { %v207_v1 = vsel %vm206_vm4, %v199_v24, %v757_v17  ;;  %v219_v2 = vsel %vm218_vm3, %v211_v25, %v761_v20 }
  0x9c   : > { %v307_v6 = vsel %vm292_vm0, %v207_v1, %v219_v2 }
  0x9e   : > { %v765_v26 = vpop.permute.xlu0 %224  ;;  %v767_v27 = vpop.permute.xlu1 %226 }
  0x9f   : > { %v232_v11 = vsel %vm230_vm6, %v765_v26, %v767_v27 }
  0xa2   : > { %v229_v28 = vpop.permute.xlu0 %228  ;;  %v769_v29 = vpop.permute.xlu1 %236 }
  0xa3   : > { %v233_v57 = vsel %vm230_vm6, %v767_v27, %v229_v28 }
  0xa6   : > { %v771_v30 = vpop.permute.xlu0 %238  ;;  %v241_v31 = vpop.permute.xlu1 %240 }
  0xa7   : > { %v328_v32 = vsel %vm292_vm0, %v229_v28, %v241_v31  ;;  %v245_v56 = vsel %vm242_vm5, %v771_v30, %v241_v31  ;;  %v244_v8 = vsel %vm242_vm5, %v769_v29, %v771_v30 }
  0xa8   : > { %386 = vrot.lane.b32.xlu1 %v328_v32, %s690_s26  ;;  %v325_v60 = vsel %vm292_vm0, %v233_v57, %v245_v56  ;;  %v322_v13 = vsel %vm292_vm0, %v232_v11, %v244_v8 }
  0xaa   : > { %v775_v33 = vpop.permute.xlu0 %222  ;;  %v777_v34 = vpop.permute.xlu1 %234 }
  0xab   : > { %v231_v14 = vsel %vm230_vm6, %v775_v33, %v765_v26  ;;  %v243_v15 = vsel %vm242_vm5, %v777_v34, %v769_v29 }
  0xac   : > { %v319_v17 = vsel %vm292_vm0, %v231_v14, %v243_v15 }
  0xae   : > { %v779_v35 = vpop.permute.xlu0 %256  ;;  %v781_v36 = vpop.permute.xlu1 %258 }
  0xaf   : > { %v265_v19 = vsel %vm264_vm8, %v779_v35, %v781_v36 }
  0xb2   : > { %v261_v37 = vpop.permute.xlu0 %260  ;;  %v783_v38 = vpop.permute.xlu1 %268 }
  0xb3   : > { %v331_v48 = vsel %vm292_vm0, %v779_v35, %v783_v38  ;;  %v266_v63 = vsel %vm264_vm8, %v781_v36, %v261_v37 }
  0xb6   : > { %v785_v39 = vpop.permute.xlu0 %270  ;;  %v273_v40 = vpop.permute.xlu1 %272 }
  0xb7   : > { %v278_v61 = vsel %vm276_vm7, %v785_v39, %v273_v40  ;;  %v277_v18 = vsel %vm276_vm7, %v783_v38, %v785_v39 }
  0xb8   : > { %v337_v3 = vsel %vm292_vm0, %v266_v63, %v278_v61  ;;  %v334_v20 = vsel %vm292_vm0, %v265_v19, %v277_v18 }
  0xba   : > { %v263_v42 = vpop.permute.xlu0 %262  ;;  %v275_v43 = vpop.permute.xlu1 %274 }
  0xbb   : > { %v267_v4 = vsel %vm264_vm8, %v261_v37, %v263_v42  ;;  %v279_v5 = vsel %vm276_vm7, %v273_v40, %v275_v43 }
  0xbc   : > { %v340_v9 = vsel %vm292_vm0, %v267_v4, %v279_v5 }
  0xbe   : > { %v281_v44 = vpop.permute.xlu0 %280  ;;  %v788_v45 = vpop.permute.xlu1 %282 }
  0xbf   : > { %396 = vrot.lane.b32.xlu0 %v281_v44, %s690_s26  ;;  %v289_v46 = vsel %vm288_vm1, %v281_v44, %v788_v45 }
  0xc0   : > { %398 = vrot.lane.b32.xlu1 %v289_v46, %s690_s26 }
  0xc2   : > { %v287_v7 = vpop.permute.xlu1 %286  ;;  %v285_v10 = vpop.permute.xlu0 %284 }
  0xc3   : > { %388 = vrot.lane.b32.xlu0 %v331_v48, %s690_s26  ;;  %v291_v12 = vsel %vm288_vm1, %v285_v10, %v287_v7  ;;  %v290_v21 = vsel %vm288_vm1, %v788_v45, %v285_v10 }
  0xc4   : > { %368 = vrot.lane.b32.xlu1 %v301_v50, %s690_s26 }
  0xc7   : > { %366 = vrot.lane.b32.xlu0 %v298_v53, %s690_s26 }
  0xc8   : > { %376 = vrot.lane.b32.xlu1 %v313_v55, %s690_s26 }
  0xcb   : > { %364 = vrot.lane.b32.xlu0 %v295_v58, %s690_s26 }
  0xcc   : > { %384 = vrot.lane.b32.xlu1 %v325_v60, %s690_s26  ;;  %v341_v60 = vld [vmem:[%s910_s1] sm:$0xf] }
  0xcf   : > { %374 = vrot.lane.b32.xlu0 %v310_v0, %s690_s26 }
  0xd0   : > { %392 = vrot.lane.b32.xlu1 %v337_v3, %s690_s26 }
  0xd3   : > { %372 = vrot.lane.b32.xlu0 %v307_v6, %s690_s26 }
  0xd4   : > { %394 = vrot.lane.b32.xlu1 %v340_v9, %s690_s26 }
  0xd7   : > { %382 = vrot.lane.b32.xlu0 %v322_v13, %s690_s26 }
  0xd8   : > { %402 = vrot.lane.b32.xlu1 %v291_v12, %s690_s26 }
  0xdb   : > { %380 = vrot.lane.b32.xlu0 %v319_v17, %s690_s26 }
  0xdf   : > { %390 = vrot.lane.b32.xlu0 %v334_v20, %s690_s26 }
  0xe3   : > { %400 = vrot.lane.b32.xlu0 %v290_v21, %s690_s26 }
  0xe7   : > { %345 = vperm.xlu0 %665, %v342_v22  }
  0xfa   : > { %v371_v23 = vpop.permute.xlu1 %370 }
 0x10a   : > { %v379_v24 = vpop.permute.xlu1 %378 }
 0x11a   : > { %v387_v25 = vpop.permute.xlu1 %386 }
 0x131   : > { %v397_v26 = vpop.permute.xlu0 %396 }
 0x132   : > { %v399_v27 = vpop.permute.xlu1 %398 }
 0x133   : > { %v417_v55 = vsel %vm404_vm10, %v397_v26, %v399_v27 }
 0x134   : > { %v437_v58 = vsel %vm292_vm0, %v417_v55, 0 }
 0x135   : > { %v389_v28 = vpop.permute.xlu0 %388 }
 0x136   : > { %v369_v29 = vpop.permute.xlu1 %368 }
 0x137   : > { %v407_v30 = vsel %vm404_vm10, %v369_v29, %v371_v23 }
 0x138   : > { %630 = vmatpush3.bf16.msra.mxu1 %v407_v30 }
 0x139   : > { %v367_v31 = vpop.permute.xlu0 %366  ;;  %631 = vmatprep.subr.bf16.mxu1 %v691_v41 }
 0x13a   : > { %v377_v32 = vpop.permute.xlu1 %376  ;;  %v406_v33 = vsel %vm404_vm10, %v367_v31, %v369_v29 }
 0x13b   : > { %445 = vmatprep.subr.bf16.mxu0 %v406_v33  ;;  %v410_v34 = vsel %vm404_vm10, %v377_v32, %v379_v24 }
 0x13c   : > { %632 = vmatpush3.bf16.msra.mxu1 %v410_v34 }
 0x13d   : > { %v365_v35 = vpop.permute.xlu0 %364  ;;  %633 = vmatprep.subr.bf16.mxu1 %v691_v41 }
 0x13e   : > { %v385_v36 = vpop.permute.xlu1 %384  ;;  %v405_v37 = vsel %vm404_vm10, %v365_v35, %v367_v31 }
 0x13f   : > { %446 = vmatpush1.bf16.msra.mxu0 %v405_v37  ;;  %v413_v38 = vsel %vm404_vm10, %v385_v36, %v387_v25 }
 0x140   : > { %634 = vmatpush3.bf16.msra.mxu1 %v413_v38 }
 0x141   : > { %v375_v39 = vpop.permute.xlu0 %374  ;;  %635 = vmatprep.subr.bf16.mxu1 %v691_v41 }
 0x142   : > { %v393_v40 = vpop.permute.xlu1 %392  ;;  %v409_v42 = vsel %vm404_vm10, %v375_v39, %v377_v32 }
 0x143   : > { %447 = vmatprep.subr.bf16.mxu0 %v409_v42 }
 0x145   : > { %v373_v43 = vpop.permute.xlu0 %372 }
 0x146   : > { %v395_v44 = vpop.permute.xlu1 %394  ;;  %v408_v45 = vsel %vm404_vm10, %v373_v43, %v375_v39 }
 0x147   : > { %448 = vmatpush1.bf16.msra.mxu0 %v408_v45  ;;  %v416_v46 = vsel %vm404_vm10, %v393_v40, %v395_v44 }
 0x148   : > { %636 = vmatpush3.bf16.msra.mxu1 %v416_v46 }
 0x149   : > { %v383_v47 = vpop.permute.xlu0 %382  ;;  %637 = vmatprep.subr.bf16.mxu1 %v691_v41 }
 0x14a   : > { %v412_v48 = vsel %vm404_vm10, %v383_v47, %v385_v36  ;;  %v403_v54 = vpop.permute.xlu1 %402 }
 0x14b   : > { %449 = vmatprep.subr.bf16.mxu0 %v412_v48 }
 0x14d   : > { %v381_v49 = vpop.permute.xlu0 %380 }
 0x14e   : > { %v411_v50 = vsel %vm404_vm10, %v381_v49, %v383_v47 }
 0x14f   : > { %450 = vmatpush1.bf16.msra.mxu0 %v411_v50 }
 0x151   : > { %v391_v51 = vpop.permute.xlu0 %390 }
 0x152   : > { %v415_v52 = vsel %vm404_vm10, %v391_v51, %v393_v40  ;;  %v414_v53 = vsel %vm404_vm10, %v389_v28, %v391_v51 }
 0x153   : > { %451 = vmatprep.subr.bf16.mxu0 %v415_v52 }
 0x154   : > { %452 = vmatpush1.bf16.msra.mxu0 %v414_v53 }
 0x155   : > { %v401_v56 = vpop.permute.xlu0 %400 }
 0x156   : > { %v418_v41 = vsel %vm404_vm10, %v399_v27, %v401_v56  ;;  %v419_v57 = vsel %vm404_vm10, %v401_v56, %v403_v54 }
 0x157   : > { %614 = vmatprep.subr.msk.bf16.mxu0 %vm292_vm0, %v418_v41  ;;  %v443_v59 = vsel %vm292_vm0, %v419_v57, 0 }
 0x158   : > { %454 = vmatpush1.bf16.msra.mxu0 %v437_v58  ;;  %638 = vmatpush3.bf16.msra.mxu1 %v443_v59 }
 0x15b   : > { %615 = vmatmul.mubr.msk.bf16.vlgmr.msra.gmra.mrb[0].mxu0 %vm432_vm11, %v341_v60  ;;  %640 = vmatmul.mubr.msk.bf16.vlgmr.msra.gmra.mrb[0].mxu1 %vm432_vm11, %v341_v60 }
 0x166   : > { %v346_v61 = vpop.permute.xlu0 %345 }
 0x22e   : > { %v479_v62 = vpop.f32.mrb[0].mxu0  ;;  %v520_v63 = vpop.f32.mrb[0].mxu1 }
 0x22f   : > { %v480_v0 = vadd.f32 %v479_v62, %v346_v61  ;;  %v521_v1 = vadd.f32 %v520_v63, %v346_v61  ;;  %v481_v2 = vpop.f32.mrb[1].mxu0  ;;  %v641_v3 = vpop.f32.mrb[1].mxu1 }
 0x230   : > { %v482_v4 = vadd.f32 %v481_v2, %v346_v61  ;;  %v483_v5 = vpop.f32.mrb[2].mxu0  ;;  %v523_v6 = vpop.f32.mrb[2].mxu1 }
 0x231   : > { %v526_v7 = vmax.f32 %v480_v0, 0.0  ;;  %v528_v8 = vmax.f32 %v521_v1, 0.0  ;;  %v484_v9 = vpop.f32.mrb[3].mxu0  ;;  %v642_v10 = vpop.f32.mrb[3].mxu1 }
 0x232   : > { %v527_v11 = vmax.f32 %v482_v4, 0.0 }
 0x233   : > { %v622_v12 = vpack.c.bf16 %v528_v8, %v528_v8 }
 0x234   : > { %v621_v13 = vpack.c.bf16 %v527_v11, %v526_v7 }
 0x235   : > { %543 = vst [vmem:[%s170_s7 + $0x8] sm:$0xf] %v622_v12 }
 0x236   : > { %542 = vst [vmem:[%s170_s7] sm:$0xff] %v621_v13 }
 0x237 PF: > { %s13_s12 = sadd.s32 1, %s680_s12  }
 0x238   : > { %p10_p4 = scmp.ge.s32.totalorder %s13_s12, 4  }
 0x23a   :  { %12 = sbr.rel (!%p10_p4) target bundleno = 1 (0x1), region = 62 }

</bundles_post_ra>
